<compile_context>
chip_gen: v5e
topology: v5e:2x2
jax: 0.10.0
libtpu: 0.0.40
codegen_flags: <defaults>
</compile_context>

<pallas_src>
import functools

import jax
import jax.numpy as jnp
from jax.experimental import pallas as pl
from jax.experimental.pallas import tpu as pltpu

_MEAN = (0.2794, 0.2954, 0.2932)
_STD = (0.2461, 0.2657, 0.2773)
_INV_STD = tuple(1.0 / s for s in _STD)
_CONTRAST = 1.2
_SATURATION = 1.2
_EPS = 1e-8  # matches kornia rgb_to_hsv eps

_LANE = 128      # TPU lane width: last dim of every block
_SUBLANE = 8     # f32 sublane alignment for the row-group axis


# ---------------------------------------------------------------------------
# tiling helpers
# ---------------------------------------------------------------------------
def _round_up(x, m):
    return ((x + m - 1) // m) * m


def _vmem_budget():
    """Return (per-block byte budget, scoped-vmem limit), generation aware."""
    try:
        info = pltpu.get_tpu_info()
        capacity = int(getattr(info, "vmem_capacity_bytes", 0)) or (64 << 20)
    except Exception:
        capacity = 64 << 20          # conservative fallback: smallest (v7x per-TC) VMEM
    # One block's worth of (inputs + outputs). Double-buffering plus elementwise
    # temporaries must stay well under the scoped limit.
    block_budget = max(1 << 20, min(8 << 20, capacity // 16))   # 8 MiB v5e/v6e, 4 MiB v7x
    vmem_limit = int(min(capacity // 2, 48 << 20))              # 48 MiB v5e/v6e, 32 MiB v7x
    return block_budget, vmem_limit


def _pick_tile_rows(total_rows, bytes_per_row, budget_bytes):
    """Largest divisor of `total_rows` (a multiple of 8) whose in+out block fits
    `budget_bytes`.  Prefers multiples of 32 (native packed-uint8 sublane tile),
    then multiples of 8.  Never degenerates to a whole-image block."""
    if total_rows * bytes_per_row <= budget_bytes:
        return total_rows
    for align in (32, _SUBLANE):
        cands = [d for d in range(align, total_rows, align)
                 if total_rows % d == 0 and d * bytes_per_row <= budget_bytes]
        if cands:
            return max(cands)
    return _SUBLANE


# ---------------------------------------------------------------------------
# kernels
# ---------------------------------------------------------------------------
def _adjust_image_block(x_ref, o_ref, *, normalize):
    # x_ref: (1, 3, TR, 128) block, any input dtype; o_ref: (1, 3, TR, 128) f32.
    def load(c):
        x = x_ref[0, c]                              # (TR, 128) full-occupancy slab
        if jnp.issubdtype(x.dtype, jnp.integer):
            x = x.astype(jnp.int32)                  # known-good widening for (u)int8
        x = x.astype(jnp.float32)
        # images/255 and adjust_contrast(1.2) folded into one multiply + clamp.
        return jnp.clip(x * (_CONTRAST / 255.0), 0.0, 1.0)

    r, g, b = load(0), load(1), load(2)

    # adjust_saturation(f) == RGB->HSV, S' = clamp(S*f, 0, 1), HSV->RGB.  Hue and
    # value are preserved, so each channel blends toward the per-pixel max:
    #   c' = V - (S'/S) * (V - c),   S'/S = min(f, (V + eps) / (V - min))
    # TODO(synk): newer kornia implements adjust_saturation as a grayscale blend
    # (torchvision-style); this matches the HSV-roundtrip variant.
    v = jnp.maximum(jnp.maximum(r, g), b)
    m = jnp.minimum(jnp.minimum(r, g), b)
    d = v - m
    # Exact divide: kernel is HBM-bound, the divide is free and bit-closer to kornia.
    ratio = jnp.where(d > 0.0, jnp.minimum(_SATURATION, (v + _EPS) / d), 0.0)

    r = v - ratio * (v - r)
    g = v - ratio * (v - g)
    b = v - ratio * (v - b)

    if normalize:
        r = (r - _MEAN[0]) * _INV_STD[0]
        g = (g - _MEAN[1]) * _INV_STD[1]
        b = (b - _MEAN[2]) * _INV_STD[2]

    o_ref[0, 0] = r
    o_ref[0, 1] = g
    o_ref[0, 2] = b


def _one_hot_block(lab_ref, o_ref, *, n_classes):
    # lab_ref: (1, 1, TR, 128) integer class map; o_ref: (1, n_classes, TR, 128) f32.
    lab = lab_ref[0, 0]
    if lab.dtype != jnp.int32:
        lab = lab.astype(jnp.int32)
    # zeros.scatter_(1, labels, 1.0) == one-hot along the class axis; each class
    # plane is a full lane-dense (TR, 128) slab -> unmasked stores.
    # Note: labels outside [0, n_classes) produce an all-zero column here
    # (torch scatter_ would raise instead).
    for c in range(n_classes):
        o_ref[0, c] = (lab == c).astype(jnp.float32)


def _fused_kernel(img_ref, lab_ref, img_out_ref, oh_ref, *, normalize, n_classes):
    _adjust_image_block(img_ref, img_out_ref, normalize=normalize)
    _one_hot_block(lab_ref, oh_ref, n_classes=n_classes)


def _image_only_kernel(img_ref, img_out_ref, *, normalize):
    _adjust_image_block(img_ref, img_out_ref, normalize=normalize)


# ---------------------------------------------------------------------------
# wrapper
# ---------------------------------------------------------------------------
def test_augmentation_forward(images, labels=None, *, normalize=True, n_classes=6):
    """Pallas equivalent of Test_Augmentation(img_size, normalize, n_classes).forward.

    images: (N, 3, H, W) uint8/int/float ; labels: (N, 1, H, W) integer or None.
    Returns (float32 (N, 3, H, W), float32 (N, n_classes, H, W) or None).
    """
    N, C, H, W = images.shape
    assert C == 3, "adjust_saturation / Normalize expect 3 RGB channels"

    P = H * W
    Ppad = _round_up(P, _LANE * _SUBLANE)    # lane-dense layout: pad H*W to 8*128
    R = Ppad // _LANE                        # row-groups of 128 pixels (multiple of 8)

    budget, vmem_limit = _vmem_budget()
    bytes_per_row = _LANE * C * (jnp.dtype(images.dtype).itemsize + 4)
    if labels is not None:
        assert labels.shape == (N, 1, H, W)
        bytes_per_row += _LANE * (jnp.dtype(labels.dtype).itemsize + 4 * n_classes)
    tr = _pick_tile_rows(R, bytes_per_row, budget)
    grid = (N, R // tr)

    def to_lane_dense(x, c):
        x = x.reshape(N, c, P)               # free reshape (contiguous NCHW)
        if Ppad != P:
            x = jnp.pad(x, ((0, 0), (0, 0), (0, Ppad - P)))
        return x.reshape(N, c, R, _LANE)

    def from_lane_dense(x, c):
        x = x.reshape(N, c, Ppad)
        if Ppad != P:
            x = x[:, :, :P]
        return x.reshape(N, c, H, W)

    img4 = to_lane_dense(images, C)
    img_spec = pl.BlockSpec((1, C, tr, _LANE), lambda n, r: (n, 0, r, 0))
    params = pltpu.CompilerParams(
        dimension_semantics=("parallel", "parallel"),
        vmem_limit_bytes=vmem_limit)

    if labels is None:
        img_out = pl.pallas_call(
            functools.partial(_image_only_kernel, normalize=normalize),
            out_shape=jax.ShapeDtypeStruct((N, C, R, _LANE), jnp.float32),
            grid=grid,
            in_specs=[img_spec],
            out_specs=img_spec,
            compiler_params=params,
        )(img4)
        oh_out = None
    else:
        lab4 = to_lane_dense(labels, 1)
        lab_spec = pl.BlockSpec((1, 1, tr, _LANE), lambda n, r: (n, 0, r, 0))
        oh_spec = pl.BlockSpec((1, n_classes, tr, _LANE), lambda n, r: (n, 0, r, 0))
        img_out, oh_out = pl.pallas_call(
            functools.partial(_fused_kernel, normalize=normalize, n_classes=n_classes),
            out_shape=(jax.ShapeDtypeStruct((N, C, R, _LANE), jnp.float32),
                       jax.ShapeDtypeStruct((N, n_classes, R, _LANE), jnp.float32)),
            grid=grid,
            in_specs=[img_spec, lab_spec],
            out_specs=(img_spec, oh_spec),
            compiler_params=params,
        )(img4, lab4)

    imgs = from_lane_dense(img_out, C)
    labs = None if oh_out is None else from_lane_dense(oh_out, n_classes)
    return imgs, labs


if __name__ == "__main__":
    key = jax.random.PRNGKey(0)
    k_img, k_lab = jax.random.split(key)

    N, C, H, W = 2, 3, 16, 16
    n_classes = 6

    # Original uint8 RGB images and int32 label maps go straight into the kernel
    # (no wrapper-side dtype pass; casts happen in-register inside the kernel).
    images = jax.random.randint(k_img, (N, C, H, W), 0, 256,
                                dtype=jnp.int32).astype(jnp.uint8)
    labels = jax.random.randint(k_lab, (N, 1, H, W), 0, n_classes, dtype=jnp.int32)

    out_images, out_labels = test_augmentation_forward(
        images, labels, normalize=True, n_classes=n_classes)

    out_images = jax.block_until_ready(out_images)
    out_labels = jax.block_until_ready(out_labels)

    assert out_images.shape == (N, C, H, W) and out_images.dtype == jnp.float32
    assert out_labels.shape == (N, n_classes, H, W) and out_labels.dtype == jnp.float32
    assert bool(jnp.all(jnp.isfinite(out_images)))
    # one-hot sanity: exactly one class active per pixel
    assert bool(jnp.all(jnp.sum(out_labels, axis=1) == 1.0))

    print("KERNEL_OK")
</pallas_src>

<mosaic_0001>
module attributes {stable_mosaic.version = 11 : i64} {
  func.func @_fused_kernel(%arg0: i32, %arg1: i32, %arg2: memref<1x3x8x128xi8, #tpu.memory_space<vmem>>, %arg3: memref<1x1x8x128xi32, #tpu.memory_space<vmem>>, %arg4: memref<1x3x8x128xf32, #tpu.memory_space<vmem>>, %arg5: memref<1x6x8x128xf32, #tpu.memory_space<vmem>>) attributes {dimension_semantics = [#tpu.dimension_semantics<parallel>, #tpu.dimension_semantics<parallel>], iteration_bounds = array<i64: 2, 1>, scalar_prefetch = 0 : i64, scratch_operands = 0 : i64, tpu.core_type = #tpu.core_type<tc>, window_params = [{transform_indices = @transform_0, window_bounds = array<i64: 1, 3, 8, 128>}, {transform_indices = @transform_1, window_bounds = array<i64: 1, 1, 8, 128>}, {transform_indices = @transform_2, window_bounds = array<i64: 1, 3, 8, 128>}, {transform_indices = @transform_3, window_bounds = array<i64: 1, 6, 8, 128>}]} {
    %c0 = arith.constant 0 : index
    %c0_0 = arith.constant 0 : index
    %c0_1 = arith.constant 0 : index
    %c0_2 = arith.constant 0 : index
    %0 = vector.load %arg2[%c0, %c0_0, %c0_1, %c0_2] : memref<1x3x8x128xi8, #tpu.memory_space<vmem>>, vector<1x1x8x128xi8>
    %1 = vector.shape_cast %0 : vector<1x1x8x128xi8> to vector<8x128xi8>
    %2 = arith.extui %1 : vector<8x128xi8> to vector<8x128xi32>
    %3 = arith.sitofp %2 : vector<8x128xi32> to vector<8x128xf32>
    %cst = arith.constant 0.00470588217 : f32
    %4 = vector.broadcast %cst : f32 to vector<8x128xf32>
    %5 = arith.mulf %3, %4 : vector<8x128xf32>
    %cst_3 = arith.constant 0.000000e+00 : f32
    %cst_4 = arith.constant 1.000000e+00 : f32
    %6 = vector.broadcast %cst_3 : f32 to vector<8x128xf32>
    %7 = arith.maximumf %6, %5 : vector<8x128xf32>
    %8 = vector.broadcast %cst_4 : f32 to vector<8x128xf32>
    %9 = arith.minimumf %8, %7 : vector<8x128xf32>
    %c0_5 = arith.constant 0 : index
    %c1 = arith.constant 1 : index
    %c0_6 = arith.constant 0 : index
    %c0_7 = arith.constant 0 : index
    %10 = vector.load %arg2[%c0_5, %c1, %c0_6, %c0_7] : memref<1x3x8x128xi8, #tpu.memory_space<vmem>>, vector<1x1x8x128xi8>
    %11 = vector.shape_cast %10 : vector<1x1x8x128xi8> to vector<8x128xi8>
    %12 = arith.extui %11 : vector<8x128xi8> to vector<8x128xi32>
    %13 = arith.sitofp %12 : vector<8x128xi32> to vector<8x128xf32>
    %cst_8 = arith.constant 0.00470588217 : f32
    %14 = vector.broadcast %cst_8 : f32 to vector<8x128xf32>
    %15 = arith.mulf %13, %14 : vector<8x128xf32>
    %cst_9 = arith.constant 0.000000e+00 : f32
    %cst_10 = arith.constant 1.000000e+00 : f32
    %16 = vector.broadcast %cst_9 : f32 to vector<8x128xf32>
    %17 = arith.maximumf %16, %15 : vector<8x128xf32>
    %18 = vector.broadcast %cst_10 : f32 to vector<8x128xf32>
    %19 = arith.minimumf %18, %17 : vector<8x128xf32>
    %c0_11 = arith.constant 0 : index
    %c2 = arith.constant 2 : index
    %c0_12 = arith.constant 0 : index
    %c0_13 = arith.constant 0 : index
    %20 = vector.load %arg2[%c0_11, %c2, %c0_12, %c0_13] : memref<1x3x8x128xi8, #tpu.memory_space<vmem>>, vector<1x1x8x128xi8>
    %21 = vector.shape_cast %20 : vector<1x1x8x128xi8> to vector<8x128xi8>
    %22 = arith.extui %21 : vector<8x128xi8> to vector<8x128xi32>
    %23 = arith.sitofp %22 : vector<8x128xi32> to vector<8x128xf32>
    %cst_14 = arith.constant 0.00470588217 : f32
    %24 = vector.broadcast %cst_14 : f32 to vector<8x128xf32>
    %25 = arith.mulf %23, %24 : vector<8x128xf32>
    %cst_15 = arith.constant 0.000000e+00 : f32
    %cst_16 = arith.constant 1.000000e+00 : f32
    %26 = vector.broadcast %cst_15 : f32 to vector<8x128xf32>
    %27 = arith.maximumf %26, %25 : vector<8x128xf32>
    %28 = vector.broadcast %cst_16 : f32 to vector<8x128xf32>
    %29 = arith.minimumf %28, %27 : vector<8x128xf32>
    %30 = arith.maximumf %9, %19 : vector<8x128xf32>
    %31 = arith.maximumf %30, %29 : vector<8x128xf32>
    %32 = arith.minimumf %9, %19 : vector<8x128xf32>
    %33 = arith.minimumf %32, %29 : vector<8x128xf32>
    %34 = arith.subf %31, %33 : vector<8x128xf32>
    %cst_17 = arith.constant 0.000000e+00 : f32
    %35 = vector.broadcast %cst_17 : f32 to vector<8x128xf32>
    %36 = arith.cmpf ogt, %34, %35 : vector<8x128xf32>
    %cst_18 = arith.constant 9.99999993E-9 : f32
    %37 = vector.broadcast %cst_18 : f32 to vector<8x128xf32>
    %38 = arith.addf %31, %37 : vector<8x128xf32>
    %39 = arith.divf %38, %34 : vector<8x128xf32>
    %cst_19 = arith.constant 1.200000e+00 : f32
    %40 = vector.broadcast %cst_19 : f32 to vector<8x128xf32>
    %41 = arith.minimumf %40, %39 : vector<8x128xf32>
    %cst_20 = arith.constant 0.000000e+00 : f32
    %42 = vector.broadcast %cst_20 : f32 to vector<8x128xf32>
    %43 = arith.select %36, %41, %42 : vector<8x128xi1>, vector<8x128xf32>
    %44 = arith.subf %31, %9 : vector<8x128xf32>
    %45 = arith.mulf %43, %44 : vector<8x128xf32>
    %46 = arith.subf %31, %45 : vector<8x128xf32>
    %47 = arith.subf %31, %19 : vector<8x128xf32>
    %48 = arith.mulf %43, %47 : vector<8x128xf32>
    %49 = arith.subf %31, %48 : vector<8x128xf32>
    %50 = arith.subf %31, %29 : vector<8x128xf32>
    %51 = arith.mulf %43, %50 : vector<8x128xf32>
    %52 = arith.subf %31, %51 : vector<8x128xf32>
    %cst_21 = arith.constant 2.794000e-01 : f32
    %53 = vector.broadcast %cst_21 : f32 to vector<8x128xf32>
    %54 = arith.subf %46, %53 : vector<8x128xf32>
    %cst_22 = arith.constant 4.06338882 : f32
    %55 = vector.broadcast %cst_22 : f32 to vector<8x128xf32>
    %56 = arith.mulf %54, %55 : vector<8x128xf32>
    %cst_23 = arith.constant 2.954000e-01 : f32
    %57 = vector.broadcast %cst_23 : f32 to vector<8x128xf32>
    %58 = arith.subf %49, %57 : vector<8x128xf32>
    %cst_24 = arith.constant 3.76364326 : f32
    %59 = vector.broadcast %cst_24 : f32 to vector<8x128xf32>
    %60 = arith.mulf %58, %59 : vector<8x128xf32>
    %cst_25 = arith.constant 2.932000e-01 : f32
    %61 = vector.broadcast %cst_25 : f32 to vector<8x128xf32>
    %62 = arith.subf %52, %61 : vector<8x128xf32>
    %cst_26 = arith.constant 3.6062026 : f32
    %63 = vector.broadcast %cst_26 : f32 to vector<8x128xf32>
    %64 = arith.mulf %62, %63 : vector<8x128xf32>
    %c0_27 = arith.constant 0 : index
    %c0_28 = arith.constant 0 : index
    %c0_29 = arith.constant 0 : index
    %c0_30 = arith.constant 0 : index
    %65 = vector.load %arg4[%c0_27, %c0_28, %c0_29, %c0_30] : memref<1x3x8x128xf32, #tpu.memory_space<vmem>>, vector<1x1x8x128xf32>
    %66 = vector.shape_cast %65 : vector<1x1x8x128xf32> to vector<8x128xf32>
    %67 = vector.shape_cast %56 : vector<8x128xf32> to vector<1x1x8x128xf32>
    tpu.vector_store %arg4[%c0_27, %c0_28, %c0_29, %c0_30], %67 {strides = array<i32>} : memref<1x3x8x128xf32, #tpu.memory_space<vmem>>, vector<1x1x8x128xf32>,
    %c0_31 = arith.constant 0 : index
    %c1_32 = arith.constant 1 : index
    %c0_33 = arith.constant 0 : index
    %c0_34 = arith.constant 0 : index
    %68 = vector.load %arg4[%c0_31, %c1_32, %c0_33, %c0_34] : memref<1x3x8x128xf32, #tpu.memory_space<vmem>>, vector<1x1x8x128xf32>
    %69 = vector.shape_cast %68 : vector<1x1x8x128xf32> to vector<8x128xf32>
    %70 = vector.shape_cast %60 : vector<8x128xf32> to vector<1x1x8x128xf32>
    tpu.vector_store %arg4[%c0_31, %c1_32, %c0_33, %c0_34], %70 {strides = array<i32>} : memref<1x3x8x128xf32, #tpu.memory_space<vmem>>, vector<1x1x8x128xf32>,
    %c0_35 = arith.constant 0 : index
    %c2_36 = arith.constant 2 : index
    %c0_37 = arith.constant 0 : index
    %c0_38 = arith.constant 0 : index
    %71 = vector.load %arg4[%c0_35, %c2_36, %c0_37, %c0_38] : memref<1x3x8x128xf32, #tpu.memory_space<vmem>>, vector<1x1x8x128xf32>
    %72 = vector.shape_cast %71 : vector<1x1x8x128xf32> to vector<8x128xf32>
    %73 = vector.shape_cast %64 : vector<8x128xf32> to vector<1x1x8x128xf32>
    tpu.vector_store %arg4[%c0_35, %c2_36, %c0_37, %c0_38], %73 {strides = array<i32>} : memref<1x3x8x128xf32, #tpu.memory_space<vmem>>, vector<1x1x8x128xf32>,
    %c0_39 = arith.constant 0 : index
    %c0_40 = arith.constant 0 : index
    %c0_41 = arith.constant 0 : index
    %c0_42 = arith.constant 0 : index
    %74 = vector.load %arg3[%c0_39, %c0_40, %c0_41, %c0_42] : memref<1x1x8x128xi32, #tpu.memory_space<vmem>>, vector<1x1x8x128xi32>
    %75 = vector.shape_cast %74 : vector<1x1x8x128xi32> to vector<8x128xi32>
    %c0_i32 = arith.constant 0 : i32
    %76 = vector.broadcast %c0_i32 : i32 to vector<8x128xi32>
    %77 = arith.cmpi eq, %75, %76 : vector<8x128xi32>
    %78 = arith.extui %77 : vector<8x128xi1> to vector<8x128xi32>
    %79 = arith.sitofp %78 : vector<8x128xi32> to vector<8x128xf32>
    %c0_43 = arith.constant 0 : index
    %c0_44 = arith.constant 0 : index
    %c0_45 = arith.constant 0 : index
    %c0_46 = arith.constant 0 : index
    %80 = vector.load %arg5[%c0_43, %c0_44, %c0_45, %c0_46] : memref<1x6x8x128xf32, #tpu.memory_space<vmem>>, vector<1x1x8x128xf32>
    %81 = vector.shape_cast %80 : vector<1x1x8x128xf32> to vector<8x128xf32>
    %82 = vector.shape_cast %79 : vector<8x128xf32> to vector<1x1x8x128xf32>
    tpu.vector_store %arg5[%c0_43, %c0_44, %c0_45, %c0_46], %82 {strides = array<i32>} : memref<1x6x8x128xf32, #tpu.memory_space<vmem>>, vector<1x1x8x128xf32>,
    %c1_i32 = arith.constant 1 : i32
    %83 = vector.broadcast %c1_i32 : i32 to vector<8x128xi32>
    %84 = arith.cmpi eq, %75, %83 : vector<8x128xi32>
    %85 = arith.extui %84 : vector<8x128xi1> to vector<8x128xi32>
    %86 = arith.sitofp %85 : vector<8x128xi32> to vector<8x128xf32>
    %c0_47 = arith.constant 0 : index
    %c1_48 = arith.constant 1 : index
    %c0_49 = arith.constant 0 : index
    %c0_50 = arith.constant 0 : index
    %87 = vector.load %arg5[%c0_47, %c1_48, %c0_49, %c0_50] : memref<1x6x8x128xf32, #tpu.memory_space<vmem>>, vector<1x1x8x128xf32>
    %88 = vector.shape_cast %87 : vector<1x1x8x128xf32> to vector<8x128xf32>
    %89 = vector.shape_cast %86 : vector<8x128xf32> to vector<1x1x8x128xf32>
    tpu.vector_store %arg5[%c0_47, %c1_48, %c0_49, %c0_50], %89 {strides = array<i32>} : memref<1x6x8x128xf32, #tpu.memory_space<vmem>>, vector<1x1x8x128xf32>,
    %c2_i32 = arith.constant 2 : i32
    %90 = vector.broadcast %c2_i32 : i32 to vector<8x128xi32>
    %91 = arith.cmpi eq, %75, %90 : vector<8x128xi32>
    %92 = arith.extui %91 : vector<8x128xi1> to vector<8x128xi32>
    %93 = arith.sitofp %92 : vector<8x128xi32> to vector<8x128xf32>
    %c0_51 = arith.constant 0 : index
    %c2_52 = arith.constant 2 : index
    %c0_53 = arith.constant 0 : index
    %c0_54 = arith.constant 0 : index
    %94 = vector.load %arg5[%c0_51, %c2_52, %c0_53, %c0_54] : memref<1x6x8x128xf32, #tpu.memory_space<vmem>>, vector<1x1x8x128xf32>
    %95 = vector.shape_cast %94 : vector<1x1x8x128xf32> to vector<8x128xf32>
    %96 = vector.shape_cast %93 : vector<8x128xf32> to vector<1x1x8x128xf32>
    tpu.vector_store %arg5[%c0_51, %c2_52, %c0_53, %c0_54], %96 {strides = array<i32>} : memref<1x6x8x128xf32, #tpu.memory_space<vmem>>, vector<1x1x8x128xf32>,
    %c3_i32 = arith.constant 3 : i32
    %97 = vector.broadcast %c3_i32 : i32 to vector<8x128xi32>
    %98 = arith.cmpi eq, %75, %97 : vector<8x128xi32>
    %99 = arith.extui %98 : vector<8x128xi1> to vector<8x128xi32>
    %100 = arith.sitofp %99 : vector<8x128xi32> to vector<8x128xf32>
    %c0_55 = arith.constant 0 : index
    %c3 = arith.constant 3 : index
    %c0_56 = arith.constant 0 : index
    %c0_57 = arith.constant 0 : index
    %101 = vector.load %arg5[%c0_55, %c3, %c0_56, %c0_57] : memref<1x6x8x128xf32, #tpu.memory_space<vmem>>, vector<1x1x8x128xf32>
    %102 = vector.shape_cast %101 : vector<1x1x8x128xf32> to vector<8x128xf32>
    %103 = vector.shape_cast %100 : vector<8x128xf32> to vector<1x1x8x128xf32>
    tpu.vector_store %arg5[%c0_55, %c3, %c0_56, %c0_57], %103 {strides = array<i32>} : memref<1x6x8x128xf32, #tpu.memory_space<vmem>>, vector<1x1x8x128xf32>,
    %c4_i32 = arith.constant 4 : i32
    %104 = vector.broadcast %c4_i32 : i32 to vector<8x128xi32>
    %105 = arith.cmpi eq, %75, %104 : vector<8x128xi32>
    %106 = arith.extui %105 : vector<8x128xi1> to vector<8x128xi32>
    %107 = arith.sitofp %106 : vector<8x128xi32> to vector<8x128xf32>
    %c0_58 = arith.constant 0 : index
    %c4 = arith.constant 4 : index
    %c0_59 = arith.constant 0 : index
    %c0_60 = arith.constant 0 : index
    %108 = vector.load %arg5[%c0_58, %c4, %c0_59, %c0_60] : memref<1x6x8x128xf32, #tpu.memory_space<vmem>>, vector<1x1x8x128xf32>
    %109 = vector.shape_cast %108 : vector<1x1x8x128xf32> to vector<8x128xf32>
    %110 = vector.shape_cast %107 : vector<8x128xf32> to vector<1x1x8x128xf32>
    tpu.vector_store %arg5[%c0_58, %c4, %c0_59, %c0_60], %110 {strides = array<i32>} : memref<1x6x8x128xf32, #tpu.memory_space<vmem>>, vector<1x1x8x128xf32>,
    %c5_i32 = arith.constant 5 : i32
    %111 = vector.broadcast %c5_i32 : i32 to vector<8x128xi32>
    %112 = arith.cmpi eq, %75, %111 : vector<8x128xi32>
    %113 = arith.extui %112 : vector<8x128xi1> to vector<8x128xi32>
    %114 = arith.sitofp %113 : vector<8x128xi32> to vector<8x128xf32>
    %c0_61 = arith.constant 0 : index
    %c5 = arith.constant 5 : index
    %c0_62 = arith.constant 0 : index
    %c0_63 = arith.constant 0 : index
    %115 = vector.load %arg5[%c0_61, %c5, %c0_62, %c0_63] : memref<1x6x8x128xf32, #tpu.memory_space<vmem>>, vector<1x1x8x128xf32>
    %116 = vector.shape_cast %115 : vector<1x1x8x128xf32> to vector<8x128xf32>
    %117 = vector.shape_cast %114 : vector<8x128xf32> to vector<1x1x8x128xf32>
    tpu.vector_store %arg5[%c0_61, %c5, %c0_62, %c0_63], %117 {strides = array<i32>} : memref<1x6x8x128xf32, #tpu.memory_space<vmem>>, vector<1x1x8x128xf32>,
    return
  }
  func.func @transform_0(%arg0: i32, %arg1: i32) -> (i32, i32, i32, i32) {
    %c0_i32 = arith.constant 0 : i32
    %c0_i32_0 = arith.constant 0 : i32
    %c0_i32_1 = arith.constant 0 : i32
    return %arg0, %c0_i32, %arg1, %c0_i32_0 : i32, i32, i32, i32
  }
  func.func @transform_1(%arg0: i32, %arg1: i32) -> (i32, i32, i32, i32) {
    %c0_i32 = arith.constant 0 : i32
    %c0_i32_0 = arith.constant 0 : i32
    %c0_i32_1 = arith.constant 0 : i32
    return %arg0, %c0_i32, %arg1, %c0_i32_0 : i32, i32, i32, i32
  }
  func.func @transform_2(%arg0: i32, %arg1: i32) -> (i32, i32, i32, i32) {
    %c0_i32 = arith.constant 0 : i32
    %c0_i32_0 = arith.constant 0 : i32
    %c0_i32_1 = arith.constant 0 : i32
    return %arg0, %c0_i32, %arg1, %c0_i32_0 : i32, i32, i32, i32
  }
  func.func @transform_3(%arg0: i32, %arg1: i32) -> (i32, i32, i32, i32) {
    %c0_i32 = arith.constant 0 : i32
    %c0_i32_0 = arith.constant 0 : i32
    %c0_i32_1 = arith.constant 0 : i32
    return %arg0, %c0_i32, %arg1, %c0_i32_0 : i32, i32, i32, i32
  }
}

</mosaic_0001>

<bundles_post_ra>
// kernel: tpu_custom_call.1
= control target key start
LH: loop header
LB: loop body
LE: loop exit
PB: predicated region body
PF: predicated region fallthrough
CT: control target
= control target key end

     0   :  { %9 = vsyncpa [#allocation3], 0  ;;  %s1067_s0 = inlined_call_operand.hbm [shape: u8[2,3,8,128], index: 0, kind: input, shape index: {}]   ;;  %s1068_s1 = inlined_call_operand.hbm [shape: s32[2,1,8,128], index: 1, kind: input, shape index: {}]   ;;  %s1069_s2 = inlined_call_operand.hbm [shape: f32[2,3,8,128], index: 2, kind: output, shape index: {0}]   ;;  %s1070_s3 = inlined_call_operand.hbm [shape: f32[2,6,8,128], index: 3, kind: output, shape index: {1}]  }
   0x1   :  { %11 = vsyncpa [#allocation3 + $0x1], 0 }
   0x2   :  { %12 = vsyncpa [#allocation6], 0 }
   0x3   :  { %14 = vsyncpa [#allocation6 + $0x1], 0 }
   0x4   :  { %15 = vsyncpa [#allocation4], 0 }
   0x5   :  { %17 = vsyncpa [#allocation4 + $0x1], 0 }
   0x6   :  { %18 = vsyncpa [#allocation9], 0 }
   0x7   :  { %20 = vsyncpa [#allocation9 + $0x1], 0  ;;  %s870_s12 = smov 0   ;;  %s872_s13 = smov 0  }
   0x8   :  { %s874_s14 = smov 0   ;;  %s876_s15 = smov 0  }
   0x9   :  { %s878_s16 = smov 0   ;;  %s880_s17 = smov 0  }
   0xa LB: > { %s544_s18 = sadd.s32 4294967295, %s843_s17   ;;  %s545_s19 = sadd.s32 4294967294, %s843_s17   ;;  %s843_s17 = sphi %s880_s17, %s26_s17   ;;  %s839_s16 = sphi %s878_s16, %s1080_s16   ;;  %s835_s15 = sphi %s876_s15, %s1079_s15   ;;  %s831_s14 = sphi %s874_s14, %s1078_s14   ;;  %s827_s13 = sphi %s872_s13, %s1077_s13   ;;  %s823_s12 = sphi %s870_s12, %s1076_s12  }
   0xb   : > { %s38_s20 = sadd.s32 1, %s839_s16  ;;  %s47_s21 = sadd.s32 1, %s831_s14 }
   0xc   : > { %p40_p0 = scmp.ge.s32.totalorder %s38_s20, 2  ;;  %p54_p1 = scmp.ne.s32.totalorder %s831_s14, %s827_s13 }
   0xd   : > { %p55_p2 = scmp.eq.s32.totalorder %s843_s17, 0  ;;  %p60_p3 = scmp.ne.s32.totalorder %s827_s13, %s823_s12 }
   0xe   : > { %s1082_s20 = smov (%p40_p0, %s38_s20), 0  ;;  %p61_p5 = scmp.eq.s32.totalorder %s544_s18, 0 }
   0xf   : > { %p911_p4 = por %p55_p2, %p54_p1  ;;  %s42_s23 = ssub.s32 %s839_s16, %s1082_s20 }
  0x10   : > { %p114_p6 = scmp.eq.s32.totalorder %s544_s18, 1  ;;  %p45_p7 = scmp.eq.s32.totalorder %s42_s23, 0 }
  0x11   : > { %p917_p8 = por %p61_p5, %p60_p3  ;;  %p120_p10 = scmp.eq.s32.totalorder %s545_s19, 1 }
  0x12   : > { %p921_p9 = por %p114_p6, %p54_p1  ;;  %p547_p12 = scmp.ge.s32.totalorder %s843_s17, 2 }
  0x13   : > { %s926_s26 = scalar_select %p45_p7, %s831_s14, %s47_s21  }
  0x14   : > { %p928_p11 = por %p120_p10, %p60_p3  ;;  %p608_p13 = scmp.lt.s32.totalorder %s843_s17, 2 }
  0x15   : > { %s168_s28 = sand.u32 1, %s831_s14   ;;  %s580_s30 = smul.u32 6, %s839_s16 }
  0x16   : > { %s579_s29 = smul.u32 6, %s168_s28  ;;  %p938_p0 = pnand %p608_p13, %p911_p4 }
  0x17   : > { %s178_s7 = scalar_lea.hbm %s1067_s0, %s580_s30  ;;  %p551_p1 = scmp.ge.s32.totalorder %s843_s17, 1 }
  0x18   : > { %s172_s8 = scalar_lea.vmem [#allocation2], %s579_s29  ;;  %s179_s10 = sshll.u32 %s178_s7, 4  ;;  %s180_s10 = int_to_ptr.hbm [resolvable:$true] %s179_s10 }
  0x19   : > { %s181_s9 = sshll.u32 %s172_s8, 4  ;;  %s169_s11 = scalar_lea.sflag [#allocation3], %s168_s28  ;;  %s182_s9 = int_to_ptr.vmem [resolvable:$true] %s181_s9 }
  0x1a   : > { %s845_s18 = smov 32   ;;  %s846_s19 = smov 2  }
  0x1b   : > { %597 = dma.hbm_to_vmem [thread:$0]  (!%p938_p0), %s180_s10, 96, %s182_s9, %s169_s11, %s845_s18, %s845_s18, %s846_s19  }
  0x1c   : > { %p209_p2 = scmp.lt.s32.totalorder %s843_s17, 3  ;;  %s549_s21 = sshll.u32 %s168_s28, 3 }
  0x1d   : > { %s550_s22 = sshll.u32 %s839_s16, 3  ;;  %s195_s29 = scalar_lea.vmem [#allocation5], %s549_s21 }
  0x1e   : > { %p210_p3 = pnand %p551_p1, %p209_p2  ;;  %s200_s30 = scalar_lea.hbm %s1068_s1, %s550_s22 }
  0x1f   : > { %s204_s6 = sshll.u32 %s195_s29, 4  ;;  %s202_s7 = sshll.u32 %s200_s30, 4  ;;  %s205_s6 = int_to_ptr.vmem [resolvable:$true] %s204_s6  ;;  %s203_s7 = int_to_ptr.hbm [resolvable:$true] %s202_s7 }
  0x20   : > { %s192_s8 = scalar_lea.sflag [#allocation6], %s168_s28  ;;  %213 = sbr.rel (%p210_p3) target bundleno = 96 (0x60), region = 28 }
  0x21   : > { %600 = dma.hbm_to_vmem [thread:$0]  (!%p938_p0), %s203_s7, 128, %s205_s6, %s192_s8  }
  0x22   : > { %s956_s9 = sand.u32 (!%p210_p3), 1, %s827_s13  }
  0x23   : > { %s581_s10 = smul.u32 (!%p210_p3), 6, %s956_s9  ;;  %s216_s11 = scalar_lea.sflag (!%p210_p3), [#allocation3], %s956_s9 }
  0x25   : > { %s219_s18 = scalar_lea.vmem [#allocation2], %s581_s10 }
  0x26   : > { %806 = dma.done.wait (%p917_p8), %s216_s11, 96  }
  0x27   : > { %808 = vsyncadd (%p917_p8), %s216_s11, 4294967200  ;;  %s552_s28 = sshll.u32 %s956_s9, 3  ;;  %s226_s4 = scalar_lea.sflag [#allocation6], %s956_s9 }
  0x28   : > { %s229_s19 = scalar_lea.vmem [#allocation5], %s552_s28 }
  0x29   : > { %810 = dma.done.wait (%p917_p8), %s226_s4, 128  }
  0x2a   : > { %812 = vsyncadd (%p917_p8), %s226_s4, 4294967168  ;;  %v576_v0 = vld [vmem:[%s219_s18] sm:$0xf]   ;;  %v554_v1 = vld [vmem:[%s219_s18 + $0x4] sm:$0x3]  ;;  %s583_s24 = smul.u32 48, %s956_s9 }
  0x2b   : > { %v577_v2 = vunpack.c.0.s8 %v576_v0  ;;  %v578_v3 = vunpack.c.1.s8 %v576_v0  ;;  %v280_v4 = vunpack.c.0.s8 %v554_v1  ;;  %s585_s21 = smul.u32 48, %s835_s15  ;;  %v330_v24 = vld [vmem:[%s229_s19] sm:$0xff]  ;;  %v847_v26 = vmov 0.0   ;;  %s366_s7 = scalar_lea.sflag [#allocation9], %s956_s9 }
  0x2c   : > { %vm331_vm0 = vcmp.eq.s32.totalorder %v330_v24, 0  ;;  %vm335_vm1 = vcmp.eq.s32.totalorder %v330_v24, 1  ;;  %s262_s30 = scalar_lea.vmem [#allocation8], %s583_s24  ;;  %vm340_vm2 = vcmp.eq.s32.totalorder %v330_v24, 2  ;;  %vm345_vm3 = vcmp.eq.s32.totalorder %v330_v24, 3  ;;  %s745_s28 = scalar_lea.hbm %s1070_s3, 96 }
  0x2d   : > { %v265_v5 = vand.u32 255, %v577_v2  ;;  %v273_v6 = vand.u32 255, %v578_v3  ;;  %v281_v7 = vand.u32 255, %v280_v4  ;;  %s396_s5 = scalar_lea.hbm %s1070_s3, %s585_s21  ;;  %v560_v27 = vsel %vm331_vm0, 1.0, %v847_v26  ;;  %s397_s29 = sshll.u32 %s262_s30, 4  ;;  %s993_s29 = int_to_ptr.vmem [resolvable:$true] %s397_s29 }
  0x2e   : > { %v561_v28 = vsel %vm335_vm1, 1.0, %v847_v26  ;;  %334 = vst [vmem:[%s262_s30] sm:$0xff] %v560_v27  ;;  %v563_v29 = vsel %vm340_vm2, 1.0, %v847_v26  ;;  %vm350_vm4 = vcmp.eq.s32.totalorder %v330_v24, 4  ;;  %s399_s6 = sshll.u32 %s396_s5, 4  ;;  %v565_v30 = vsel %vm345_vm3, 1.0, %v847_v26  ;;  %s400_s6 = int_to_ptr.hbm [resolvable:$true] %s399_s6 }
  0x2f   : > { %v266_v8 = vcvt.s32.f32 %v265_v5  ;;  %v274_v9 = vcvt.s32.f32 %v273_v6  ;;  %v282_v10 = vcvt.s32.f32 %v281_v7  ;;  %562 = vst [vmem:[%s262_s30 + $0x8] sm:$0xff] %v561_v28  ;;  %v567_v31 = vsel %vm350_vm4, 1.0, %v847_v26  ;;  %s739_s8 = sshra.s32 %s400_s6, 4  ;;  %s740_s8 = int_to_ptr.hbm [resolvable:$true] %s739_s8 }
  0x30   : > { %vm355_vm5 = vcmp.eq.s32.totalorder %v330_v24, 5  ;;  %564 = vst [vmem:[%s262_s30 + $0x10] sm:$0xff] %v563_v29  ;;  %s741_s10 = scalar_lea.hbm %s740_s8, 48  ;;  %p746_p7 = scmp.lt.s32.totalorder %s740_s8, %s1070_s3 }
  0x31   : > { %v267_v11 = vmul.f32 0.004705882, %v266_v8  ;;  %v275_v12 = vmul.f32 0.004705882, %v274_v9  ;;  %v283_v13 = vmul.f32 0.004705882, %v282_v10  ;;  %p742_p4 = scmp.ne.s32.totalorder %s740_s8, %s741_s10  ;;  %p747_p8 = scmp.lt.s32.totalorder %s745_s28, %s741_s10 }
  0x32   : > { %v569_v32 = vsel %vm355_vm5, 1.0, %v847_v26  ;;  %566 = vst [vmem:[%s262_s30 + $0x18] sm:$0xff] %v565_v30 }
  0x33   : > { %v268_v14 = vmax.f32 %v267_v11, 0.0  ;;  %v276_v15 = vmax.f32 %v275_v12, 0.0  ;;  %v284_v16 = vmax.f32 %v283_v13, 0.0  ;;  %568 = vst [vmem:[%s262_s30 + $0x20] sm:$0xff] %v567_v31  ;;  %p743_p5 = pnand %p742_p4, %p921_p9  ;;  %p748_p10 = por %p747_p8, %p746_p7 }
  0x34   : > { %570 = vst [vmem:[%s262_s30 + $0x28] sm:$0xff] %v569_v32 }
  0x35   : > { %v970_v17 = vmin.f32 %v268_v14, 1.0  ;;  %v972_v18 = vmin.f32 %v276_v15, 1.0  ;;  %v974_v19 = vmin.f32 %v284_v16, 1.0  ;;  %p744_p6 = pneg %p743_p5 }
  0x37   : > { %v286_v20 = vmax.f32 %v970_v17, %v972_v18  ;;  %v288_v21 = vmin.f32 %v970_v17, %v972_v18  ;;  %p749_p13 = pnand %p748_p10, %p744_p6 }
  0x39   : > { %v983_v22 = vmax.f32 %v286_v20, %v974_v19  ;;  %v289_v23 = vmin.f32 %v288_v21, %v974_v19 }
  0x3b   : > { %v987_v25 = vsub.f32 %v983_v22, %v289_v23 }
  0x3d   : > { %663 = vrcp.f32 %v987_v25  ;;  %v304_v35 = vand.u32 2147483648, %v987_v25 }
  0x43   : > { %v664_v33 = vpop.eup %663 }
  0x44   : > { %v294_v34 = vmul.f32 %v664_v33, %v987_v25 }
  0x45   : > { %752 = shalt.err (!%p749_p13)
}
  0x46   : > { %s848_s24 = smov 128   ;;  %s849_s21 = smov 8   ;;  %v295_v36 = vsub.f32 1.0, %v294_v34  ;;  %vm298_vm6 = vweird.f32 %v987_v25  ;;  %vm299_vm7 = vweird.f32 %v664_v33  ;;  %v302_v37 = vand.u32 2147483647, %v987_v25 }
  0x47   : > { %591 = dma.vmem_to_hbm [thread:$0]  (%p921_p9), %s993_s29, 768, %s400_s6, %s366_s7, %s848_s24, %s848_s24, %s849_s21   ;;  %vm300_vm8 = vmor %vm298_vm6, %vm299_vm7  ;;  %v305_v39 = vor.u32 1.1754944e-38, %v304_v35  ;;  %v292_v40 = vadd.f32 1e-08, %v983_v22  ;;  %vm291_vm10 = vcmp.gt.f32.partialorder %v987_v25, 0.0  ;;  %v310_v45 = vsub.f32 %v983_v22, %v970_v17 }
  0x48   : > { %v296_v38 = vmul.f32 %v664_v33, %v295_v36  ;;  %vm303_vm9 = vcmp.eq.f32.partialorder %v302_v37, 8.507059e+37  ;;  %v313_v46 = vsub.f32 %v983_v22, %v972_v18  ;;  %v316_v47 = vsub.f32 %v983_v22, %v974_v19  ;;  %s582_s22 = smul.u32 24, %s956_s9  ;;  %s361_s8 = scalar_lea.sflag [#allocation4], %s956_s9 }
  0x49   : > { %s584_s23 = smul.u32 24, %s835_s15  ;;  %s773_s4 = scalar_lea.hbm %s1069_s2, 48 }
  0x4a   : > { %v297_v41 = vadd.f32 %v664_v33, %v296_v38  ;;  %s255_s6 = scalar_lea.vmem [#allocation7], %s582_s22 }
  0x4b   : > { %s378_s29 = scalar_lea.hbm %s1069_s2, %s584_s23  ;;  %s379_s15 = sshll.u32 %s255_s6, 4  ;;  %s380_s15 = int_to_ptr.vmem [resolvable:$true] %s379_s15 }
  0x4c   : > { %v301_v42 = vsel %vm300_vm8, %v664_v33, %v297_v41  ;;  %s381_s7 = sshll.u32 %s378_s29, 4  ;;  %s382_s7 = int_to_ptr.hbm [resolvable:$true] %s381_s7 }
  0x4d   : > { %v306_v43 = vsel %vm303_vm9, %v305_v39, %v301_v42  ;;  %s767_s10 = sshra.s32 %s382_s7, 4  ;;  %s768_s10 = int_to_ptr.hbm [resolvable:$true] %s767_s10 }
  0x4e   : > { %v307_v44 = vmul.f32 %v306_v43, %v292_v40  ;;  %s769_s11 = scalar_lea.hbm %s768_s10, 24  ;;  %p774_p3 = scmp.lt.s32.totalorder %s768_s10, %s1069_s2 }
  0x4f   : > { %p770_p0 = scmp.ne.s32.totalorder %s768_s10, %s769_s11  ;;  %p775_p4 = scmp.lt.s32.totalorder %s773_s4, %s769_s11 }
  0x50   : > { %v308_v48 = vmin.f32 %v307_v44, 1.2 }
  0x51   : > { %p771_p1 = pnand %p770_p0, %p921_p9  ;;  %p776_p5 = por %p775_p4, %p774_p3 }
  0x52   : > { %v309_v49 = vsel %vm291_vm10, %v308_v48, 0.0 }
  0x53   : > { %v311_v50 = vmul.f32 %v310_v45, %v309_v49  ;;  %v314_v51 = vmul.f32 %v313_v46, %v309_v49  ;;  %v317_v52 = vmul.f32 %v316_v47, %v309_v49  ;;  %p772_p2 = pneg %p771_p1 }
  0x55   : > { %v312_v53 = vsub.f32 %v983_v22, %v311_v50  ;;  %v315_v54 = vsub.f32 %v983_v22, %v314_v51  ;;  %v318_v55 = vsub.f32 %v983_v22, %v317_v52  ;;  %p777_p6 = pnand %p776_p5, %p772_p2 }
  0x57   : > { %v555_v56 = vadd.f32 -0.2794, %v312_v53  ;;  %v556_v57 = vadd.f32 -0.2954, %v315_v54  ;;  %v557_v58 = vadd.f32 -0.2932, %v318_v55 }
  0x59   : > { %v320_v59 = vmul.f32 4.063389, %v555_v56  ;;  %v322_v60 = vmul.f32 3.7636433, %v556_v57  ;;  %v324_v61 = vmul.f32 3.6062026, %v557_v58 }
  0x5b   : > { %325 = vst [vmem:[%s255_s6] sm:$0xff] %v320_v59 }
  0x5c   : > { %558 = vst [vmem:[%s255_s6 + $0x8] sm:$0xff] %v322_v60 }
  0x5d   : > { %559 = vst [vmem:[%s255_s6 + $0x10] sm:$0xff] %v324_v61 }
  0x5e   : > { %780 = shalt.err (!%p777_p6)
}
  0x5f   : > { %590 = dma.vmem_to_hbm [thread:$0]  (%p921_p9), %s380_s15, 384, %s382_s7, %s361_s8, %s848_s24, %s848_s24, %s849_s21  }
  0x60 PF: > { %s414_s9 = sand.u32 1, %s823_s12   ;;  %p602_p7 = pnand %p547_p12, %p928_p11 }
  0x61   : > { %s415_s23 = scalar_lea.sflag [#allocation4], %s414_s9 }
  0x62   : > { %p603_p8 = pneg %p602_p7 }
  0x64   : > { %814 = dma.done.wait (%p603_p8), %s415_s23, 384  }
  0x65   : > { %816 = vsyncadd (%p603_p8), %s415_s23, 4294966912  ;;  %s425_s5 = scalar_lea.sflag [#allocation9], %s414_s9 }
  0x66   : > { %818 = dma.done.wait (%p603_p8), %s425_s5, 768  }
  0x67   : > { %820 = vsyncadd (%p603_p8), %s425_s5, 4294966528  ;;  %s26_s17 = sadd.s32 1, %s843_s17   ;;  %s1076_s12 = smov %s827_s13 }
  0x68   : > { %p23_p10 = scmp.ge.s32.totalorder %s26_s17, 4   ;;  %s1077_s13 = smov %s831_s14 }
  0x69   : > { %s1078_s14 = smov %s926_s26  ;;  %s1079_s15 = smov %s839_s16 }
  0x6a   : > { %s1080_s16 = smov %s1082_s20  ;;  %25 = sbr.rel (!%p23_p10) target bundleno = 10 (0xa), region = 112 }
  0x6f   :  { %431 = vsyncpa [#allocation3], 1 }
  0x70   :  { %433 = vsyncpa [#allocation3 + $0x1], 1 }
  0x71   :  { %434 = vsyncpa [#allocation6], 1 }
  0x72   :  { %436 = vsyncpa [#allocation6 + $0x1], 1 }
  0x73   :  { %437 = vsyncpa [#allocation4], 1 }
  0x74   :  { %439 = vsyncpa [#allocation4 + $0x1], 1 }
  0x75   :  { %440 = vsyncpa [#allocation9], 1 }
  0x76   :  { %442 = vsyncpa [#allocation9 + $0x1], 1 }

</bundles_post_ra>
